<compile_context>
chip_gen: v5e
topology: v5e:2x2
jax: 0.10.0
libtpu: 0.0.40
codegen_flags: <defaults>
</compile_context>

<pallas_src>
import math

import jax
import jax.numpy as jnp
from jax.experimental import pallas as pl
from jax.experimental.pallas import tpu as pltpu  # noqa: F401  (TPU backend)

# ----------------------------- model dims -----------------------------------
B = 2          # batch
S = 8          # seq length
D = 32         # d_model (features)
H = 4          # heads
DK = D // H    # per-head dim
DFF = 64       # feed-forward hidden
N = B * S      # batch folded into rows
EPS = 1e-6
NEG_BIG = -1e9


# ------------------------------ kernel ---------------------------------------
def encoder_block_kernel(
    x_ref,        # (N, D)        activations, batch folded into rows
    maskb_ref,    # (N, N)        additive mask bias: 0 valid, -1e9 masked
    wqkv_ref,     # (D, 3D)       [Wq | Wk | Wv] packed column-wise
    bqkv_ref,     # (1, 3D)       [bq | bk | bv]
    wo_ref,       # (D, D)
    w1_ref,       # (D, DFF)
    b1_ref,       # (1, DFF)
    w2_ref,       # (DFF, D)
    vecs_ref,     # (6, D)        bo, b2, ln1a, ln1b, ln2a, ln2b (packed)
    out_ref,      # (N, D)
):
    x = x_ref[...]                         # (N, D) f32
    vec = vecs_ref[...]                    # (6, D)
    bo, b2 = vec[0:1], vec[1:2]
    ln1a, ln1b, ln2a, ln2b = vec[2:3], vec[3:4], vec[4:5], vec[5:6]

    def layernorm(v, alpha, bias):
        mean = jnp.mean(v, axis=-1, keepdims=True)
        # torch.std uses the unbiased estimator (n-1)
        var = jnp.sum((v - mean) ** 2, axis=-1, keepdims=True) * (1.0 / (D - 1))
        inv = pl.reciprocal(jnp.sqrt(var) + EPS, approx=False)
        return alpha + (v - mean) * inv + bias

    # ---------------- sublayer 1: multi-head self attention ----------------
    xn = layernorm(x, ln1a, ln1b)                                  # (N, D)

    # Single lane-dense QKV projection: (N, D) @ (D, 3D) -> 96-lane output.
    qkv = jnp.dot(xn, wqkv_ref[...],
                  preferred_element_type=jnp.float32) + bqkv_ref[...]   # (N, 3D)

    maskb = maskb_ref[...]                                         # (N, N) additive
    q_all = qkv[:, 0:D] * (1.0 / math.sqrt(DK))                    # scale q, not s

    # Per-head scores (block-diagonal over heads; H is small and static).
    scores = []
    for h in range(H):
        qh = q_all[:, h * DK:(h + 1) * DK]                         # (N, DK) lane slice
        kh = qkv[:, D + h * DK:D + (h + 1) * DK]                   # (N, DK)
        s_h = jnp.einsum('qd,kd->qk', qh, kh,
                         preferred_element_type=jnp.float32) + maskb   # (N, N)
        scores.append(s_h)

    # Softmax vectorized over all heads at once (sublane-aligned stack).
    s = jnp.concatenate(scores, axis=0)                            # (H*N, N)
    s = s - jnp.max(s, axis=-1, keepdims=True)
    p = jnp.exp(s)
    p = p * pl.reciprocal(jnp.sum(p, axis=-1, keepdims=True), approx=False)

    # Per-head attention output, merged into a lane-dense (N, H*DK) slab.
    outs = []
    for h in range(H):
        vh = qkv[:, 2 * D + h * DK:2 * D + (h + 1) * DK]           # (N, DK)
        p_h = p[h * N:(h + 1) * N, :]                              # (N, N)
        outs.append(jnp.dot(p_h, vh, preferred_element_type=jnp.float32))
    om = jnp.concatenate(outs, axis=1)                             # (N, D)

    # Fused head-merge + output projection: one (N, D) @ (D, D) push.
    attn = jnp.dot(om, wo_ref[...], preferred_element_type=jnp.float32) + bo
    x1 = x + attn                                                  # residual 1

    # ---------------- sublayer 2: feed-forward -----------------------------
    xn2 = layernorm(x1, ln2a, ln2b)                                # (N, D)
    hdn = jnp.dot(xn2, w1_ref[...], preferred_element_type=jnp.float32) + b1_ref[...]
    hdn = jnp.maximum(hdn, 0.0)                                    # relu
    ff = jnp.dot(hdn, w2_ref[...], preferred_element_type=jnp.float32) + b2
    out_ref[...] = x1 + ff                                         # residual 2


# ------------------------------ wrapper ---------------------------------------
def encoder_block(x, mask, params):
    """x: (B, S, D) f32, mask: (B, 1, S) f32 (0 => masked key position)."""
    (wq, bq, wk, bk, wv, bv, wo, bo, w1, b1, w2, b2,
     ln1a, ln1b, ln2a, ln2b) = params

    # Fold batch into rows.
    x2 = x.reshape(N, D)

    # Additive mask bias: 0 where (same batch AND key valid), -1e9 otherwise.
    # exp(score - 1e9 - max) underflows to exactly 0 in f32, so this matches the
    # reference masked_fill(-1e9) + per-batch softmax.
    bidx = jnp.repeat(jnp.arange(B), S)                            # (N,)
    same_b = bidx[:, None] == bidx[None, :]                        # (N, N)
    key_ok = (mask[:, 0, :].reshape(N) != 0.0)                     # (N,)
    maskb = jnp.where(same_b & key_ok[None, :], 0.0, NEG_BIG).astype(jnp.float32)

    # Pack QKV weights/biases column-wise (pure layout work, OUTSIDE the kernel).
    wqkv = jnp.concatenate([wq, wk, wv], axis=1)                   # (D, 3D)
    bqkv = jnp.concatenate([bq, bk, bv], axis=1)                   # (1, 3D)

    # Pack the small (1, D) vectors into a single array (one DMA instead of six).
    vecs = jnp.concatenate([bo, b2, ln1a, ln1b, ln2a, ln2b], axis=0)   # (6, D)

    out2 = pl.pallas_call(
        encoder_block_kernel,
        out_shape=jax.ShapeDtypeStruct((N, D), jnp.float32),
    )(x2, maskb, wqkv, bqkv, wo, w1, b1, w2, vecs)

    return out2.reshape(B, S, D)


# ------------------------------ reference (pure JAX) --------------------------
def encoder_block_ref(x, mask, params):
    (wq, bq, wk, bk, wv, bv, wo, bo, w1, b1, w2, b2,
     ln1a, ln1b, ln2a, ln2b) = params

    def ln(v, a, b_):
        mean = v.mean(-1, keepdims=True)
        std = jnp.sqrt(((v - mean) ** 2).sum(-1, keepdims=True) / (v.shape[-1] - 1))
        return a + (v - mean) / (std + EPS) + b_

    xn = ln(x, ln1a, ln1b)
    q = xn @ wq + bq
    k = xn @ wk + bk
    v = xn @ wv + bv
    qh = q.reshape(B, S, H, DK).transpose(0, 2, 1, 3)
    kh = k.reshape(B, S, H, DK).transpose(0, 2, 1, 3)
    vh = v.reshape(B, S, H, DK).transpose(0, 2, 1, 3)
    s = jnp.einsum("bhqd,bhkd->bhqk", qh, kh) / math.sqrt(DK)
    s = jnp.where(mask[:, None, :, :] == 0.0, -1e9, s)
    p = jax.nn.softmax(s, axis=-1)
    o = jnp.einsum("bhqk,bhkd->bhqd", p, vh).transpose(0, 2, 1, 3).reshape(B, S, D)
    x1 = x + (o @ wo + bo)
    xn2 = ln(x1, ln2a, ln2b)
    ff = jnp.maximum(xn2 @ w1 + b1, 0.0) @ w2 + b2
    return x1 + ff


# ------------------------------ main ------------------------------------------
if __name__ == "__main__":
    key = jax.random.PRNGKey(0)
    keys = jax.random.split(key, 12)

    def init(k, shape, fan_in):
        return jax.random.normal(k, shape, jnp.float32) / math.sqrt(fan_in)

    wq = init(keys[0], (D, D), D);   bq = init(keys[1], (1, D), D)
    wk = init(keys[2], (D, D), D);   bk = init(keys[3], (1, D), D)
    wv = init(keys[4], (D, D), D);   bv = init(keys[5], (1, D), D)
    wo = init(keys[6], (D, D), D);   bo = init(keys[7], (1, D), D)
    w1 = init(keys[8], (D, DFF), D); b1 = init(keys[9], (1, DFF), D)
    w2 = init(keys[10], (DFF, D), DFF); b2 = init(keys[11], (1, D), DFF)
    ln1a = jnp.ones((1, D), jnp.float32);  ln1b = jnp.zeros((1, D), jnp.float32)
    ln2a = jnp.ones((1, D), jnp.float32);  ln2b = jnp.zeros((1, D), jnp.float32)

    params = (wq, bq, wk, bk, wv, bv, wo, bo, w1, b1, w2, b2,
              ln1a, ln1b, ln2a, ln2b)

    xkey, _ = jax.random.split(jax.random.PRNGKey(0))
    x = jax.random.normal(xkey, (B, S, D), jnp.float32)
    # src_mask: batch 0 fully valid; batch 1 has last 2 key positions masked.
    mask = jnp.ones((B, 1, S), jnp.float32)
    mask = mask.at[1, 0, S - 2:].set(0.0)

    out = encoder_block(x, mask, params)
    out = jax.block_until_ready(out)

    ref = encoder_block_ref(x, mask, params)
    assert out.shape == (B, S, D)
    assert jnp.allclose(out, ref, atol=1e-4, rtol=1e-4), (
        float(jnp.max(jnp.abs(out - ref))))

    print("KERNEL_OK")
</pallas_src>

<mosaic_0001>
module attributes {stable_mosaic.version = 11 : i64} {
  func.func @encoder_block_kernel(%arg0: memref<16x32xf32, #tpu.memory_space<vmem>>, %arg1: memref<16x16xf32, #tpu.memory_space<vmem>>, %arg2: memref<32x96xf32, #tpu.memory_space<vmem>>, %arg3: memref<1x96xf32, #tpu.memory_space<vmem>>, %arg4: memref<32x32xf32, #tpu.memory_space<vmem>>, %arg5: memref<32x64xf32, #tpu.memory_space<vmem>>, %arg6: memref<1x64xf32, #tpu.memory_space<vmem>>, %arg7: memref<64x32xf32, #tpu.memory_space<vmem>>, %arg8: memref<6x32xf32, #tpu.memory_space<vmem>>, %arg9: memref<16x32xf32, #tpu.memory_space<vmem>>) attributes {dimension_semantics = [], scalar_prefetch = 0 : i64, scratch_operands = 0 : i64, tpu.core_type = #tpu.core_type<tc>} {
    %c0 = arith.constant 0 : index
    %c0_0 = arith.constant 0 : index
    %0 = vector.load %arg0[%c0, %c0_0] : memref<16x32xf32, #tpu.memory_space<vmem>>, vector<16x32xf32>
    %c0_1 = arith.constant 0 : index
    %c0_2 = arith.constant 0 : index
    %1 = vector.load %arg8[%c0_1, %c0_2] : memref<6x32xf32, #tpu.memory_space<vmem>>, vector<6x32xf32>
    %2 = vector.extract_strided_slice %1 {offsets = [0, 0], sizes = [1, 32], strides = [1, 1]} : vector<6x32xf32> to vector<1x32xf32>
    %3 = vector.extract_strided_slice %1 {offsets = [1, 0], sizes = [1, 32], strides = [1, 1]} : vector<6x32xf32> to vector<1x32xf32>
    %4 = vector.extract_strided_slice %1 {offsets = [2, 0], sizes = [1, 32], strides = [1, 1]} : vector<6x32xf32> to vector<1x32xf32>
    %5 = vector.extract_strided_slice %1 {offsets = [3, 0], sizes = [1, 32], strides = [1, 1]} : vector<6x32xf32> to vector<1x32xf32>
    %6 = vector.extract_strided_slice %1 {offsets = [4, 0], sizes = [1, 32], strides = [1, 1]} : vector<6x32xf32> to vector<1x32xf32>
    %7 = vector.extract_strided_slice %1 {offsets = [5, 0], sizes = [1, 32], strides = [1, 1]} : vector<6x32xf32> to vector<1x32xf32>
    %cst = arith.constant dense<0.000000e+00> : vector<16xf32>
    %8 = vector.multi_reduction <add>, %0, %cst [1] : vector<16x32xf32> to vector<16xf32>
    %9 = vector.shape_cast %8 : vector<16xf32> to vector<16x1xf32>
    %cst_3 = arith.constant 3.200000e+01 : f32
    %10 = vector.broadcast %cst_3 : f32 to vector<16x1xf32>
    %11 = arith.divf %9, %10 : vector<16x1xf32>
    %12 = vector.broadcast %11 : vector<16x1xf32> to vector<16x32xf32>
    %13 = arith.subf %0, %12 : vector<16x32xf32>
    %14 = arith.mulf %13, %13 : vector<16x32xf32>
    %cst_4 = arith.constant dense<0.000000e+00> : vector<16xf32>
    %15 = vector.multi_reduction <add>, %14, %cst_4 [1] : vector<16x32xf32> to vector<16xf32>
    %16 = vector.shape_cast %15 : vector<16xf32> to vector<16x1xf32>
    %cst_5 = arith.constant 0.0322580636 : f32
    %17 = vector.broadcast %cst_5 : f32 to vector<16x1xf32>
    %18 = arith.mulf %16, %17 : vector<16x1xf32>
    %19 = math.sqrt %18 : vector<16x1xf32>
    %cst_6 = arith.constant 9.99999997E-7 : f32
    %20 = vector.broadcast %cst_6 : f32 to vector<16x1xf32>
    %21 = arith.addf %19, %20 : vector<16x1xf32>
    %22 = tpu.reciprocal %21 : vector<16x1xf32> -> vector<16x1xf32>
    %23 = vector.broadcast %11 : vector<16x1xf32> to vector<16x32xf32>
    %24 = arith.subf %0, %23 : vector<16x32xf32>
    %25 = vector.broadcast %22 : vector<16x1xf32> to vector<16x32xf32>
    %26 = arith.mulf %24, %25 : vector<16x32xf32>
    %27 = vector.broadcast %4 : vector<1x32xf32> to vector<16x32xf32>
    %28 = arith.addf %27, %26 : vector<16x32xf32>
    %29 = vector.broadcast %5 : vector<1x32xf32> to vector<16x32xf32>
    %30 = arith.addf %28, %29 : vector<16x32xf32>
    %c0_7 = arith.constant 0 : index
    %c0_8 = arith.constant 0 : index
    %31 = vector.load %arg2[%c0_7, %c0_8] : memref<32x96xf32, #tpu.memory_space<vmem>>, vector<32x96xf32>
    %cst_9 = arith.constant dense<0.000000e+00> : vector<16x96xf32>
    %32 = tpu.matmul %30, %31, %cst_9 {dimension_numbers = #tpu.dot_dimension_numbers<[1], [0], [0], [1], [0, 0, 1, 1], [], []>} : vector<16x32xf32>, vector<32x96xf32>, vector<16x96xf32> -> vector<16x96xf32>
    %c0_10 = arith.constant 0 : index
    %c0_11 = arith.constant 0 : index
    %33 = vector.load %arg3[%c0_10, %c0_11] : memref<1x96xf32, #tpu.memory_space<vmem>>, vector<1x96xf32>
    %34 = vector.broadcast %33 : vector<1x96xf32> to vector<16x96xf32>
    %35 = arith.addf %32, %34 : vector<16x96xf32>
    %c0_12 = arith.constant 0 : index
    %c0_13 = arith.constant 0 : index
    %36 = vector.load %arg1[%c0_12, %c0_13] : memref<16x16xf32, #tpu.memory_space<vmem>>, vector<16x16xf32>
    %37 = vector.extract_strided_slice %35 {offsets = [0, 0], sizes = [16, 32], strides = [1, 1]} : vector<16x96xf32> to vector<16x32xf32>
    %cst_14 = arith.constant 0.353553385 : f32
    %38 = vector.broadcast %cst_14 : f32 to vector<16x32xf32>
    %39 = arith.mulf %37, %38 : vector<16x32xf32>
    %40 = vector.extract_strided_slice %39 {offsets = [0, 0], sizes = [16, 8], strides = [1, 1]} : vector<16x32xf32> to vector<16x8xf32>
    %41 = vector.extract_strided_slice %35 {offsets = [0, 32], sizes = [16, 8], strides = [1, 1]} : vector<16x96xf32> to vector<16x8xf32>
    "tpu.trace_start"() <{level = 10 : i32, message = "qd,kd->qk"}> : () -> ()
    %cst_15 = arith.constant dense<0.000000e+00> : vector<16x16xf32>
    %42 = tpu.matmul %40, %41, %cst_15 {dimension_numbers = #tpu.dot_dimension_numbers<[1], [1], [0], [0], [0, 0, 1, 0], [], []>} : vector<16x8xf32>, vector<16x8xf32>, vector<16x16xf32> -> vector<16x16xf32>
    "tpu.trace_stop"() : () -> ()
    %43 = arith.addf %42, %36 : vector<16x16xf32>
    %44 = vector.extract_strided_slice %39 {offsets = [0, 8], sizes = [16, 8], strides = [1, 1]} : vector<16x32xf32> to vector<16x8xf32>
    %45 = vector.extract_strided_slice %35 {offsets = [0, 40], sizes = [16, 8], strides = [1, 1]} : vector<16x96xf32> to vector<16x8xf32>
    "tpu.trace_start"() <{level = 10 : i32, message = "qd,kd->qk"}> : () -> ()
    %cst_16 = arith.constant dense<0.000000e+00> : vector<16x16xf32>
    %46 = tpu.matmul %44, %45, %cst_16 {dimension_numbers = #tpu.dot_dimension_numbers<[1], [1], [0], [0], [0, 0, 1, 0], [], []>} : vector<16x8xf32>, vector<16x8xf32>, vector<16x16xf32> -> vector<16x16xf32>
    "tpu.trace_stop"() : () -> ()
    %47 = arith.addf %46, %36 : vector<16x16xf32>
    %48 = vector.extract_strided_slice %39 {offsets = [0, 16], sizes = [16, 8], strides = [1, 1]} : vector<16x32xf32> to vector<16x8xf32>
    %49 = vector.extract_strided_slice %35 {offsets = [0, 48], sizes = [16, 8], strides = [1, 1]} : vector<16x96xf32> to vector<16x8xf32>
    "tpu.trace_start"() <{level = 10 : i32, message = "qd,kd->qk"}> : () -> ()
    %cst_17 = arith.constant dense<0.000000e+00> : vector<16x16xf32>
    %50 = tpu.matmul %48, %49, %cst_17 {dimension_numbers = #tpu.dot_dimension_numbers<[1], [1], [0], [0], [0, 0, 1, 0], [], []>} : vector<16x8xf32>, vector<16x8xf32>, vector<16x16xf32> -> vector<16x16xf32>
    "tpu.trace_stop"() : () -> ()
    %51 = arith.addf %50, %36 : vector<16x16xf32>
    %52 = vector.extract_strided_slice %39 {offsets = [0, 24], sizes = [16, 8], strides = [1, 1]} : vector<16x32xf32> to vector<16x8xf32>
    %53 = vector.extract_strided_slice %35 {offsets = [0, 56], sizes = [16, 8], strides = [1, 1]} : vector<16x96xf32> to vector<16x8xf32>
    "tpu.trace_start"() <{level = 10 : i32, message = "qd,kd->qk"}> : () -> ()
    %cst_18 = arith.constant dense<0.000000e+00> : vector<16x16xf32>
    %54 = tpu.matmul %52, %53, %cst_18 {dimension_numbers = #tpu.dot_dimension_numbers<[1], [1], [0], [0], [0, 0, 1, 0], [], []>} : vector<16x8xf32>, vector<16x8xf32>, vector<16x16xf32> -> vector<16x16xf32>
    "tpu.trace_stop"() : () -> ()
    %55 = arith.addf %54, %36 : vector<16x16xf32>
    %56 = tpu.concatenate %43, %47, %51, %55 in 0 : vector<16x16xf32>, vector<16x16xf32>, vector<16x16xf32>, vector<16x16xf32> -> vector<64x16xf32>
    %cst_19 = arith.constant dense<0xFF800000> : vector<64xf32>
    %57 = vector.multi_reduction <maximumf>, %56, %cst_19 [1] : vector<64x16xf32> to vector<64xf32>
    %58 = vector.shape_cast %57 : vector<64xf32> to vector<64x1xf32>
    %59 = vector.broadcast %58 : vector<64x1xf32> to vector<64x16xf32>
    %60 = arith.subf %56, %59 : vector<64x16xf32>
    %61 = math.exp %60 : vector<64x16xf32>
    %cst_20 = arith.constant dense<0.000000e+00> : vector<64xf32>
    %62 = vector.multi_reduction <add>, %61, %cst_20 [1] : vector<64x16xf32> to vector<64xf32>
    %63 = vector.shape_cast %62 : vector<64xf32> to vector<64x1xf32>
    %64 = tpu.reciprocal %63 : vector<64x1xf32> -> vector<64x1xf32>
    %65 = vector.broadcast %64 : vector<64x1xf32> to vector<64x16xf32>
    %66 = arith.mulf %61, %65 : vector<64x16xf32>
    %67 = vector.extract_strided_slice %35 {offsets = [0, 64], sizes = [16, 8], strides = [1, 1]} : vector<16x96xf32> to vector<16x8xf32>
    %68 = vector.extract_strided_slice %66 {offsets = [0, 0], sizes = [16, 16], strides = [1, 1]} : vector<64x16xf32> to vector<16x16xf32>
    %cst_21 = arith.constant dense<0.000000e+00> : vector<16x8xf32>
    %69 = tpu.matmul %68, %67, %cst_21 {dimension_numbers = #tpu.dot_dimension_numbers<[1], [0], [0], [1], [0, 0, 1, 1], [], []>} : vector<16x16xf32>, vector<16x8xf32>, vector<16x8xf32> -> vector<16x8xf32>
    %70 = vector.extract_strided_slice %35 {offsets = [0, 72], sizes = [16, 8], strides = [1, 1]} : vector<16x96xf32> to vector<16x8xf32>
    %71 = vector.extract_strided_slice %66 {offsets = [16, 0], sizes = [16, 16], strides = [1, 1]} : vector<64x16xf32> to vector<16x16xf32>
    %cst_22 = arith.constant dense<0.000000e+00> : vector<16x8xf32>
    %72 = tpu.matmul %71, %70, %cst_22 {dimension_numbers = #tpu.dot_dimension_numbers<[1], [0], [0], [1], [0, 0, 1, 1], [], []>} : vector<16x16xf32>, vector<16x8xf32>, vector<16x8xf32> -> vector<16x8xf32>
    %73 = vector.extract_strided_slice %35 {offsets = [0, 80], sizes = [16, 8], strides = [1, 1]} : vector<16x96xf32> to vector<16x8xf32>
    %74 = vector.extract_strided_slice %66 {offsets = [32, 0], sizes = [16, 16], strides = [1, 1]} : vector<64x16xf32> to vector<16x16xf32>
    %cst_23 = arith.constant dense<0.000000e+00> : vector<16x8xf32>
    %75 = tpu.matmul %74, %73, %cst_23 {dimension_numbers = #tpu.dot_dimension_numbers<[1], [0], [0], [1], [0, 0, 1, 1], [], []>} : vector<16x16xf32>, vector<16x8xf32>, vector<16x8xf32> -> vector<16x8xf32>
    %76 = vector.extract_strided_slice %35 {offsets = [0, 88], sizes = [16, 8], strides = [1, 1]} : vector<16x96xf32> to vector<16x8xf32>
    %77 = vector.extract_strided_slice %66 {offsets = [48, 0], sizes = [16, 16], strides = [1, 1]} : vector<64x16xf32> to vector<16x16xf32>
    %cst_24 = arith.constant dense<0.000000e+00> : vector<16x8xf32>
    %78 = tpu.matmul %77, %76, %cst_24 {dimension_numbers = #tpu.dot_dimension_numbers<[1], [0], [0], [1], [0, 0, 1, 1], [], []>} : vector<16x16xf32>, vector<16x8xf32>, vector<16x8xf32> -> vector<16x8xf32>
    %79 = tpu.concatenate %69, %72, %75, %78 in 1 : vector<16x8xf32>, vector<16x8xf32>, vector<16x8xf32>, vector<16x8xf32> -> vector<16x32xf32>
    %c0_25 = arith.constant 0 : index
    %c0_26 = arith.constant 0 : index
    %80 = vector.load %arg4[%c0_25, %c0_26] : memref<32x32xf32, #tpu.memory_space<vmem>>, vector<32x32xf32>
    %cst_27 = arith.constant dense<0.000000e+00> : vector<16x32xf32>
    %81 = tpu.matmul %79, %80, %cst_27 {dimension_numbers = #tpu.dot_dimension_numbers<[1], [0], [0], [1], [0, 0, 1, 1], [], []>} : vector<16x32xf32>, vector<32x32xf32>, vector<16x32xf32> -> vector<16x32xf32>
    %82 = vector.broadcast %2 : vector<1x32xf32> to vector<16x32xf32>
    %83 = arith.addf %81, %82 : vector<16x32xf32>
    %84 = arith.addf %0, %83 : vector<16x32xf32>
    %cst_28 = arith.constant dense<0.000000e+00> : vector<16xf32>
    %85 = vector.multi_reduction <add>, %84, %cst_28 [1] : vector<16x32xf32> to vector<16xf32>
    %86 = vector.shape_cast %85 : vector<16xf32> to vector<16x1xf32>
    %cst_29 = arith.constant 3.200000e+01 : f32
    %87 = vector.broadcast %cst_29 : f32 to vector<16x1xf32>
    %88 = arith.divf %86, %87 : vector<16x1xf32>
    %89 = vector.broadcast %88 : vector<16x1xf32> to vector<16x32xf32>
    %90 = arith.subf %84, %89 : vector<16x32xf32>
    %91 = arith.mulf %90, %90 : vector<16x32xf32>
    %cst_30 = arith.constant dense<0.000000e+00> : vector<16xf32>
    %92 = vector.multi_reduction <add>, %91, %cst_30 [1] : vector<16x32xf32> to vector<16xf32>
    %93 = vector.shape_cast %92 : vector<16xf32> to vector<16x1xf32>
    %cst_31 = arith.constant 0.0322580636 : f32
    %94 = vector.broadcast %cst_31 : f32 to vector<16x1xf32>
    %95 = arith.mulf %93, %94 : vector<16x1xf32>
    %96 = math.sqrt %95 : vector<16x1xf32>
    %cst_32 = arith.constant 9.99999997E-7 : f32
    %97 = vector.broadcast %cst_32 : f32 to vector<16x1xf32>
    %98 = arith.addf %96, %97 : vector<16x1xf32>
    %99 = tpu.reciprocal %98 : vector<16x1xf32> -> vector<16x1xf32>
    %100 = vector.broadcast %88 : vector<16x1xf32> to vector<16x32xf32>
    %101 = arith.subf %84, %100 : vector<16x32xf32>
    %102 = vector.broadcast %99 : vector<16x1xf32> to vector<16x32xf32>
    %103 = arith.mulf %101, %102 : vector<16x32xf32>
    %104 = vector.broadcast %6 : vector<1x32xf32> to vector<16x32xf32>
    %105 = arith.addf %104, %103 : vector<16x32xf32>
    %106 = vector.broadcast %7 : vector<1x32xf32> to vector<16x32xf32>
    %107 = arith.addf %105, %106 : vector<16x32xf32>
    %c0_33 = arith.constant 0 : index
    %c0_34 = arith.constant 0 : index
    %108 = vector.load %arg5[%c0_33, %c0_34] : memref<32x64xf32, #tpu.memory_space<vmem>>, vector<32x64xf32>
    %cst_35 = arith.constant dense<0.000000e+00> : vector<16x64xf32>
    %109 = tpu.matmul %107, %108, %cst_35 {dimension_numbers = #tpu.dot_dimension_numbers<[1], [0], [0], [1], [0, 0, 1, 1], [], []>} : vector<16x32xf32>, vector<32x64xf32>, vector<16x64xf32> -> vector<16x64xf32>
    %c0_36 = arith.constant 0 : index
    %c0_37 = arith.constant 0 : index
    %110 = vector.load %arg6[%c0_36, %c0_37] : memref<1x64xf32, #tpu.memory_space<vmem>>, vector<1x64xf32>
    %111 = vector.broadcast %110 : vector<1x64xf32> to vector<16x64xf32>
    %112 = arith.addf %109, %111 : vector<16x64xf32>
    %cst_38 = arith.constant 0.000000e+00 : f32
    %113 = vector.broadcast %cst_38 : f32 to vector<16x64xf32>
    %114 = arith.maximumf %112, %113 : vector<16x64xf32>
    %c0_39 = arith.constant 0 : index
    %c0_40 = arith.constant 0 : index
    %115 = vector.load %arg7[%c0_39, %c0_40] : memref<64x32xf32, #tpu.memory_space<vmem>>, vector<64x32xf32>
    %cst_41 = arith.constant dense<0.000000e+00> : vector<16x32xf32>
    %116 = tpu.matmul %114, %115, %cst_41 {dimension_numbers = #tpu.dot_dimension_numbers<[1], [0], [0], [1], [0, 0, 1, 1], [], []>} : vector<16x64xf32>, vector<64x32xf32>, vector<16x32xf32> -> vector<16x32xf32>
    %117 = vector.broadcast %3 : vector<1x32xf32> to vector<16x32xf32>
    %118 = arith.addf %116, %117 : vector<16x32xf32>
    %119 = arith.addf %84, %118 : vector<16x32xf32>
    %c0_42 = arith.constant 0 : index
    %c0_43 = arith.constant 0 : index
    %120 = vector.load %arg9[%c0_42, %c0_43] : memref<16x32xf32, #tpu.memory_space<vmem>>, vector<16x32xf32>
    tpu.vector_store %arg9[%c0_42, %c0_43], %119 {strides = array<i32>} : memref<16x32xf32, #tpu.memory_space<vmem>>, vector<16x32xf32>,
    return
  }
}

</mosaic_0001>

<bundles_post_ra>
// kernel: tpu_custom_call.1
= control target key start
LH: loop header
LB: loop body
LE: loop exit
PB: predicated region body
PF: predicated region fallthrough
CT: control target
= control target key end

     0   :  { %14 = vsyncpa [#allocation3], 0  ;;  %s1511_s0 = inlined_call_operand.hbm [shape: f32[16,32], index: 0, kind: input, shape index: {}]   ;;  %s1512_s1 = inlined_call_operand.hbm [shape: f32[16,16], index: 1, kind: input, shape index: {}]   ;;  %s1513_s2 = inlined_call_operand.vmem [shape: f32[32,96], index: 2, kind: input, shape index: {}]   ;;  %s1514_s3 = inlined_call_operand.vmem [shape: f32[1,96], index: 3, kind: input, shape index: {}]   ;;  %s1515_s4 = inlined_call_operand.vmem [shape: f32[32,32], index: 4, kind: input, shape index: {}]   ;;  %s1516_s5 = inlined_call_operand.vmem [shape: f32[32,64], index: 5, kind: input, shape index: {}]   ;;  %s1517_s6 = inlined_call_operand.vmem [shape: f32[1,64], index: 6, kind: input, shape index: {}]   ;;  %s1518_s7 = inlined_call_operand.vmem [shape: f32[64,32], index: 7, kind: input, shape index: {}]   ;;  %s1519_s8 = inlined_call_operand.hbm [shape: f32[6,32], index: 8, kind: input, shape index: {}]   ;;  %s1520_s9 = inlined_call_operand.hbm [shape: f32[16,32], index: 9, kind: output, shape index: {}]  }
   0x1   :  { %15 = vsyncpa [#allocation6], 0 }
   0x2   :  { %16 = vsyncpa [#allocation4], 0  ;;  %s34_s11 = sshll.u32 %s1512_s1, 4  ;;  %s1180_s12 = smov [#allocation5]   ;;  %s35_s11 = int_to_ptr.hbm [resolvable:$true] %s34_s11 }
   0x3   :  { %s36_s13 = sshll.u32 %s1180_s12, 4  ;;  %s21_s16 = sshll.u32 %s1511_s0, 4  ;;  %s37_s13 = int_to_ptr.vmem [resolvable:$true] %s36_s13  ;;  %s22_s16 = int_to_ptr.hbm [resolvable:$true] %s21_s16 }
   0x4   :  { %s1181_s17 = smov 128   ;;  %s1182_s18 = smov 8  }
   0x5   :  { %42 = dma.hbm_to_vmem [thread:$0]  %s35_s11, 256, %s37_s13, [#allocation6], %s1181_s17, %s1181_s17, %s1182_s18  }
   0x6   :  { %s1183_s19 = smov [#allocation2]   ;;  %s60_s1 = sshll.u32 %s1519_s8, 4  ;;  %s61_s1 = int_to_ptr.hbm [resolvable:$true] %s60_s1 }
   0x7   :  { %s23_s20 = sshll.u32 %s1183_s19, 4  ;;  %s1184_s0 = smov [#allocation7]   ;;  %s24_s20 = int_to_ptr.vmem [resolvable:$true] %s23_s20 }
   0x8   :  { %29 = dma.hbm_to_vmem [thread:$0]  %s22_s16, 256, %s24_s20, [#allocation3], %s1181_s17, %s1181_s17, %s1182_s18  }
   0x9   :  { %s62_s23 = sshll.u32 %s1184_s0, 4  ;;  %s63_s23 = int_to_ptr.vmem [resolvable:$true] %s62_s23 }
   0xa   :  { %65 = dma.hbm_to_vmem [thread:$0]  %s61_s1, 128, %s63_s23, [#allocation6]  }
   0xb   :  { %1174 = dma.done.wait [#allocation3], 256  }
   0xc   :  { %1175 = vsyncadd [#allocation3], 4294967040 }
   0xd   :  { %1176 = dma.done.wait [#allocation6], 384  }
   0xe   :  { %1177 = vsyncadd [#allocation6], 4294966912  ;;  %vm81_vm0 = vcmask 261120   ;;  %v1265_v0 = vld [vmem:[#allocation2] sm:$0xff]  ;;  %v1269_v2 = vld [vmem:[#allocation2 + $0x8] sm:$0xff]  ;;  %v1185_v4 = vmov 32.0  }
   0xf   :  { %v82_v1 = vsel %vm81_vm0, %v1265_v0, 0.0  ;;  %v85_v3 = vsel %vm81_vm0, %v1269_v2, 0.0  ;;  %1027 = vrcp.f32 %v1185_v4  ;;  %v174_v21 = vld [vmem:[%s1513_s2 + $0x18] sm:$0xff]  ;;  %v173_v22 = vld [vmem:[%s1513_s2 + $0x10] sm:$0xff]  ;;  %v172_v24 = vld [vmem:[%s1513_s2 + $0x8] sm:$0xff]  ;;  %s1186_s11 = smov 88  }
  0x10   :  { %83 = vadd.xlane.f32.xlu0 %v82_v1  ;;  %197 = vmatpush.msra.mxu0 %v174_v21  ;;  %v171_v26 = vld [vmem:[%s1513_s2] sm:$0xff]  ;;  %s1187_s12 = smov 80   ;;  %s1188_s13 = smov 120   ;;  %vm218_vm14 = vcmask 64512   ;;  %vm369_vm15 = vcmask 130048  }
  0x11   :  { %v1301_v57 = vld [vmem:[#allocation7] sm:$0x3f]  ;;  %s1189_s14 = smov 72   ;;  %s1190_s15 = smov 112  }
  0x12   :  { %198 = vmatpush.msra.mxu0 %v173_v22  ;;  %v165_v62 = vperm.slane %v1301_v57, 2  ;;  %v168_v4 = vperm.slane %v1301_v57, 3  ;;  %s1192_s16 = smov 104   ;;  %s1193_s19 = smov 56  }
  0x13   :  { %s1194_s20 = smov 48   ;;  %s1195_s21 = smov 40  }
  0x14   :  { %199 = vmatpush.msra.mxu0 %v172_v24  ;;  %s1196_s22 = smov 64   ;;  %s1197_s1 = smov 24  }
  0x15   :  { %v1028_v5 = vpop.eup %1027  ;;  %s1198_s0 = smov 16   ;;  %s939_s2 = sshll.u32 %s1520_s9, 4  ;;  %s940_s2 = int_to_ptr.hbm [resolvable:$true] %s939_s2 }
  0x16   :  { %v89_v6 = vmul.f32 32.0, %v1028_v5  ;;  %vm93_vm1 = vweird.f32 %v1028_v5  ;;  %200 = vmatpush.msra.mxu0 %v171_v26 }
  0x18   :  { %86 = vadd.xlane.f32.xlu0 %v85_v3  ;;  %v90_v7 = vsub.f32 1.0, %v89_v6 }
  0x1a   :  { %v91_v8 = vmul.f32 %v1028_v5, %v90_v7 }
  0x1c   :  { %v92_v9 = vadd.f32 %v1028_v5, %v91_v8 }
  0x1e   :  { %v1273_v10 = vsel %vm93_vm1, %v1028_v5, %v92_v9 }
  0x83   :  { %v84_v11 = vpop.xlane.xlu0 %83 }
  0x84   :  { %v95_v12 = vmul.f32 %v1273_v10, %v84_v11 }
  0x86   :  { %v1277_v13 = vsub.f32 %v1265_v0, %v95_v12 }
  0x88   :  { %v99_v14 = vmul.f32 %v1277_v13, %v1277_v13 }
  0x8a   :  { %v101_v15 = vsel %vm81_vm0, %v99_v14, 0.0 }
  0x8b   :  { %102 = vadd.xlane.f32.xlu1 %v101_v15  ;;  %v87_v16 = vpop.xlane.xlu0 %86 }
  0x8c   :  { %v96_v17 = vmul.f32 %v1273_v10, %v87_v16 }
  0x8e   :  { %v1284_v18 = vsub.f32 %v1269_v2, %v96_v17 }
  0x90   :  { %v100_v19 = vmul.f32 %v1284_v18, %v1284_v18 }
  0x92   :  { %v104_v20 = vsel %vm81_vm0, %v100_v19, 0.0 }
  0x93   :  { %105 = vadd.xlane.f32.xlu1 %v104_v20  ;;  %v1025_v20 = vld [vmem:[%s1514_s3] ss:$0 sm:$0xff]  ;;  %s1191_s3 = smov 96  }
  0xfe   :  { %v103_v23 = vpop.xlane.xlu1 %102 }
  0xff   :  { %v107_v25 = vmul.f32 0.032258064, %v103_v23 }
 0x101   :  { %1029 = vrsqrt.f32 %v107_v25  ;;  %vm116_vm2 = vcmp.eq.f32.partialorder %v107_v25, inf  ;;  %v119_v39 = vand.u32 2147483648, %v107_v25  ;;  %vm118_vm3 = vcmp.eq.f32.partialorder %v107_v25, 0.0 }
 0x106   :  { %v106_v27 = vpop.xlane.xlu1 %105 }
 0x107   :  { %v1030_v28 = vpop.eup %1029  ;;  %v108_v29 = vmul.f32 0.032258064, %v106_v27 }
 0x108   :  { %v110_v30 = vmul.f32 %v1030_v28, %v107_v25 }
 0x109   :  { %1031 = vrsqrt.f32 %v108_v29  ;;  %vm128_vm4 = vcmp.eq.f32.partialorder %v108_v29, inf  ;;  %v131_v47 = vand.u32 2147483648, %v108_v29  ;;  %vm130_vm5 = vcmp.eq.f32.partialorder %v108_v29, 0.0 }
 0x10a   :  { %v111_v31 = vmul.f32 %v1030_v28, %v110_v30 }
 0x10c   :  { %v112_v32 = vmul.f32 0.5, %v111_v31 }
 0x10e   :  { %v113_v33 = vsub.f32 1.5, %v112_v32 }
 0x10f   :  { %v1032_v34 = vpop.eup %1031 }
 0x110   :  { %v114_v35 = vmul.f32 %v1030_v28, %v113_v33  ;;  %v122_v36 = vmul.f32 %v1032_v34, %v108_v29 }
 0x112   :  { %v115_v37 = vmul.f32 %v114_v35, %v107_v25  ;;  %v123_v38 = vmul.f32 %v1032_v34, %v122_v36 }
 0x114   :  { %v117_v40 = vsel %vm116_vm2, %v107_v25, %v115_v37  ;;  %v124_v41 = vmul.f32 0.5, %v123_v38 }
 0x115   :  { %v120_v42 = vsel %vm118_vm3, %v119_v39, %v117_v40 }
 0x116   :  { %v125_v43 = vsub.f32 1.5, %v124_v41  ;;  %v133_v44 = vadd.f32 1e-06, %v120_v42  ;;  %v208_v41 = vld [vmem:[#allocation5] sm:$0xff] }
 0x118   :  { %v126_v45 = vmul.f32 %v1032_v34, %v125_v43  ;;  %1033 = vrcp.f32 %v133_v44  ;;  %v146_v54 = vand.u32 2147483648, %v133_v44  ;;  %v144_v56 = vand.u32 2147483647, %v133_v44 }
 0x119   :  { %vm140_vm7 = vweird.f32 %v133_v44 }
 0x11a   :  { %v127_v46 = vmul.f32 %v126_v45, %v108_v29  ;;  %v147_v60 = vor.u32 1.1754944e-38, %v146_v54  ;;  %vm145_vm9 = vcmp.eq.f32.partialorder %v144_v56, 8.507059e+37 }
 0x11c   :  { %v129_v48 = vsel %vm128_vm4, %v108_v29, %v127_v46  ;;  %v209_v46 = vld [vmem:[#allocation5 + $0x8] sm:$0xff] }
 0x11d   :  { %v132_v49 = vsel %vm130_vm5, %v131_v47, %v129_v48 }
 0x11e   :  { %v1034_v50 = vpop.eup %1033  ;;  %v134_v51 = vadd.f32 1e-06, %v132_v49 }
 0x11f   :  { %v136_v52 = vmul.f32 %v1034_v50, %v133_v44  ;;  %vm141_vm6 = vweird.f32 %v1034_v50 }
 0x120   :  { %1035 = vrcp.f32 %v134_v51  ;;  %vm142_vm8 = vmor %vm140_vm7, %vm141_vm6  ;;  %v160_v6 = vand.u32 2147483648, %v134_v51  ;;  %v158_v9 = vand.u32 2147483647, %v134_v51  ;;  %vm154_vm11 = vweird.f32 %v134_v51 }
 0x121   :  { %v137_v53 = vsub.f32 1.0, %v136_v52 }
 0x122   :  { %v161_v14 = vor.u32 1.1754944e-38, %v160_v6  ;;  %vm159_vm13 = vcmp.eq.f32.partialorder %v158_v9, 8.507059e+37 }
 0x123   :  { %v138_v55 = vmul.f32 %v1034_v50, %v137_v53 }
 0x125   :  { %v139_v58 = vadd.f32 %v1034_v50, %v138_v55 }
 0x126   :  { %v1036_v59 = vpop.eup %1035 }
 0x127   :  { %v143_v61 = vsel %vm142_vm8, %v1034_v50, %v139_v58  ;;  %v150_v63 = vmul.f32 %v1036_v59, %v134_v51  ;;  %vm155_vm10 = vweird.f32 %v1036_v59 }
 0x128   :  { %v148_v1 = vsel %vm145_vm9, %v147_v60, %v143_v61  ;;  %vm156_vm12 = vmor %vm154_vm11, %vm155_vm10 }
 0x129   :  { %v163_v3 = vmul.f32 %v148_v1, %v1277_v13  ;;  %v151_v5 = vsub.f32 1.0, %v150_v63 }
 0x12b   :  { %v166_v7 = vadd.f32 %v165_v62, %v163_v3  ;;  %v152_v8 = vmul.f32 %v1036_v59, %v151_v5 }
 0x12d   :  { %v169_v11 = vadd.f32 %v168_v4, %v166_v7  ;;  %v153_v12 = vadd.f32 %v1036_v59, %v152_v8 }
 0x12f   :  { %953 = vmatmul.msk.f32.vlgmr.msra.gmra.mxu0 %vm81_vm0, %v169_v11  ;;  %v157_v15 = vsel %vm156_vm12, %v1036_v59, %v153_v12 }
 0x130   :  { %v162_v16 = vsel %vm159_vm13, %v161_v14, %v157_v15 }
 0x131   :  { %v164_v13 = vmul.f32 %v162_v16, %v1284_v18 }
 0x133   :  { %v167_v17 = vadd.f32 %v165_v62, %v164_v13 }
 0x135   :  { %v170_v19 = vadd.f32 %v168_v4, %v167_v17 }
 0x137   :  { %954 = vmatmul.msk.f32.gmra.mxu0 %vm81_vm0, %v170_v19 }
 0x1ac   :  { %v202_v21 = vpop.f32.mrf.mxu0 }
 0x1ad   :  { %v203_v22 = vadd.f32 %v1025_v20, %v202_v21 }
 0x1af   :  { %256 = vrot.lane.b32.xlu0 %v203_v22, %s1186_s11  ;;  %295 = vrot.lane.b32.xlu1 %v203_v22, %s1187_s12  ;;  %v210_v23 = vmul.f32 0.35355338, %v203_v22 }
 0x1b1   :  { %252 = vrot.lane.b32.xlu2 %v210_v23, %s1188_s13 }
 0x1b4   :  { %v205_v24 = vpop.f32.mrf.mxu0 }
 0x1b5   :  { %v206_v25 = vadd.f32 %v1025_v20, %v205_v24 }
 0x1b7   :  { %334 = vrot.lane.b32.xlu1 %v203_v22, %s1189_s14  ;;  %v211_v18 = vmul.f32 0.35355338, %v206_v25  ;;  %v1312_v26 = vpack.i.bf16 %v203_v22, %v206_v25 }
 0x1b9   :  { %291 = vrot.lane.b32.xlu2 %v210_v23, %s1190_s15  ;;  %254 = vrot.lane.b32.xlu0 %v211_v18, %s1188_s13 }
 0x1bf   :  { %216 = vrot.lane.b32.xlu1 %v206_v25, %s1191_s3 }
 0x1c1   :  { %258 = vrot.lane.b32.xlu2 %v206_v25, %s1186_s11  ;;  %330 = vrot.lane.b32.xlu0 %v210_v23, %s1192_s16 }
 0x1c9   :  { %297 = vrot.lane.b32.xlu2 %v206_v25, %s1187_s12  ;;  %214 = vrot.lane.b32.xlu0 %v203_v22, %s1191_s3 }
 0x1d1   :  { %336 = vrot.lane.b32.xlu2 %v206_v25, %s1189_s14 }
 0x1d9   :  { %293 = vrot.lane.b32.xlu2 %v211_v18, %s1190_s15 }
 0x1e1   :  { %332 = vrot.lane.b32.xlu2 %v211_v18, %s1192_s16 }
 0x20b   :  { %v253_v27 = vpop.permute.xlu2 %252 }
 0x213   :  { %v292_v28 = vpop.permute.xlu2 %291 }
 0x21b   :  { %v259_v29 = vpop.permute.xlu2 %258 }
 0x21c   :  { %959 = vmatpush.xpose.msk.msra.mxu2 %vm218_vm14, %v259_v29 }
 0x221   :  { %v296_v30 = vpop.permute.xlu1 %295  ;;  %v257_v31 = vpop.permute.xlu0 %256 }
 0x222   :  { %960 = vmatpush.xpose.msk.msra.mxu2 %vm218_vm14, %v257_v31 }
 0x223   :  { %v298_v32 = vpop.permute.xlu2 %297 }
 0x224   :  { %963 = vmatpush.xpose.msk.msra.mxu3 %vm218_vm14, %v298_v32 }
 0x225   :  { %961 = vmatmul.msk.f32.vlgmr.msra.gmra.mxu2 %vm218_vm14, %v253_v27 }
 0x228   :  { %964 = vmatpush.xpose.msk.msra.mxu3 %vm218_vm14, %v296_v30 }
 0x229   :  { %v335_v33 = vpop.permute.xlu1 %334 }
 0x22b   :  { %v337_v34 = vpop.permute.xlu2 %336  ;;  %965 = vmatmul.msk.f32.vlgmr.msra.gmra.mxu3 %vm218_vm14, %v292_v28  ;;  %v255_v35 = vpop.permute.xlu0 %254 }
 0x22c   :  { %967 = vmatpush.xpose.msk.msrb.mxu0 %vm218_vm14, %v337_v34 }
 0x22d   :  { %962 = vmatmul.msk.f32.gmra.mxu2 %vm218_vm14, %v255_v35 }
 0x230   :  { %968 = vmatpush.xpose.msk.msrb.mxu0 %vm218_vm14, %v335_v33 }
 0x231   :  { %v217_v36 = vpop.permute.xlu1 %216 }
 0x232   :  { %955 = vmatpush.xpose.msk.msra.mxu1 %vm218_vm14, %v217_v36 }
 0x233   :  { %v294_v37 = vpop.permute.xlu2 %293  ;;  %v331_v38 = vpop.permute.xlu0 %330 }
 0x234   :  { %966 = vmatmul.msk.f32.gmra.mxu3 %vm218_vm14, %v294_v37  ;;  %969 = vmatmul.msk.f32.vlgmr.msrb.gmra.mxu0 %vm218_vm14, %v331_v38 }
 0x23b   :  { %v333_v39 = vpop.permute.xlu2 %332  ;;  %v215_v40 = vpop.permute.xlu0 %214 }
 0x23c   :  { %956 = vmatpush.xpose.msk.msra.mxu1 %vm218_vm14, %v215_v40  ;;  %970 = vmatmul.msk.f32.gmra.mxu0 %vm218_vm14, %v333_v39 }
 0x23f   :  { %957 = vmatmul.msk.f32.vlgmr.msra.gmra.mxu1 %vm218_vm14, %v210_v23 }
 0x247   :  { %958 = vmatmul.msk.f32.gmra.mxu1 %vm218_vm14, %v211_v18 }
 0x2a8   :  { %v285_v42 = vpop.f32.mrf.mxu2 }
 0x2a9   :  { %v286_v43 = vadd.f32 %v285_v42, %v208_v41 }
 0x2ab   :  { %v376_v44 = vsel %vm369_vm15, %v286_v43, -inf }
 0x2ac   :  { %377 = vmax.xlane.f32.xlu2 %v376_v44 }
 0x2ae   :  { %v324_v45 = vpop.f32.mrf.mxu3 }
 0x2af   :  { %v325_v47 = vadd.f32 %v324_v45, %v208_v41 }
 0x2b0   :  { %v288_v48 = vpop.f32.mrf.mxu2 }
 0x2b1   :  { %v289_v49 = vadd.f32 %v288_v48, %v209_v46  ;;  %v363_v50 = vpop.f32.mrf.mxu0  ;;  %v382_v51 = vsel %vm369_vm15, %v325_v47, -inf }
 0x2b2   :  { %v364_v52 = vadd.f32 %v363_v50, %v208_v41  ;;  %383 = vmax.xlane.f32.xlu1 %v382_v51 }
 0x2b3   :  { %v379_v53 = vsel %vm369_vm15, %v289_v49, -inf }
 0x2b4   :  { %380 = vmax.xlane.f32.xlu0 %v379_v53  ;;  %v388_v54 = vsel %vm369_vm15, %v364_v52, -inf }
 0x2b5   :  { %389 = vmax.xlane.f32.xlu2 %v388_v54 }
 0x2b7   :  { %v327_v55 = vpop.f32.mrf.mxu3 }
 0x2b8   :  { %v328_v56 = vadd.f32 %v327_v55, %v209_v46 }
 0x2b9   :  { %v366_v58 = vpop.f32.mrf.mxu0 }
 0x2ba   :  { %v367_v59 = vadd.f32 %v366_v58, %v209_v46  ;;  %v385_v60 = vsel %vm369_vm15, %v328_v56, -inf }
 0x2bb   :  { %386 = vmax.xlane.f32.xlu1 %v385_v60 }
 0x2bc   :  { %v246_v61 = vpop.f32.mrf.mxu1  ;;  %v391_v62 = vsel %vm369_vm15, %v367_v59, -inf }
 0x2bd   :  { %v247_v63 = vadd.f32 %v246_v61, %v208_v41  ;;  %392 = vmax.xlane.f32.xlu0 %v391_v62 }
 0x2bf   :  { %v370_v1 = vsel %vm369_vm15, %v247_v63, -inf }
 0x2c0   :  { %371 = vmax.xlane.f32.xlu2 %v370_v1 }
 0x2c4   :  { %v249_v3 = vpop.f32.mrf.mxu1 }
 0x2c5   :  { %v250_v4 = vadd.f32 %v249_v3, %v209_v46 }
 0x2c7   :  { %v373_v5 = vsel %vm369_vm15, %v250_v4, -inf }
 0x2c8   :  { %374 = vmax.xlane.f32.xlu0 %v373_v5 }
 0x31f   :  { %v378_v6 = vpop.xlane.xlu2 %377 }
 0x320   :  { %v396_v7 = vsub.f32 %v286_v43, %v378_v6 }
 0x322   :  { %v406_v8 = vmul.f32 1.442695, %v396_v7 }
 0x324   :  { %1037 = vpow2.f32 %v406_v8 }
 0x325   :  { %v384_v9 = vpop.xlane.xlu1 %383 }
 0x326   :  { %v398_v11 = vsub.f32 %v325_v47, %v384_v9 }
 0x327   :  { %v381_v12 = vpop.xlane.xlu0 %380 }
 0x328   :  { %v410_v14 = vmul.f32 1.442695, %v398_v11  ;;  %v390_v15 = vpop.xlane.xlu2 %389  ;;  %v397_v28 = vsub.f32 %v289_v49, %v381_v12 }
 0x329   :  { %v400_v16 = vsub.f32 %v364_v52, %v390_v15 }
 0x32a   :  { %v1338_v13 = vpop.eup %1037  ;;  %1039 = vpow2.f32 %v410_v14  ;;  %v408_v31 = vmul.f32 1.442695, %v397_v28 }
 0x32b   :  { %v414_v17 = vmul.f32 1.442695, %v400_v16  ;;  %v424_v19 = vsel %vm369_vm15, %v1338_v13, 0.0 }
 0x32c   :  { %425 = vadd.xlane.f32.xlu1 %v424_v19 }
 0x32d   :  { %1041 = vpow2.f32 %v414_v17 }
 0x32e   :  { %v387_v20 = vpop.xlane.xlu1 %386 }
 0x32f   :  { %v399_v21 = vsub.f32 %v328_v56, %v387_v20 }
 0x330   :  { %v1342_v22 = vpop.eup %1039  ;;  %v393_v23 = vpop.xlane.xlu0 %392 }
 0x331   :  { %v412_v24 = vmul.f32 1.442695, %v399_v21  ;;  %v401_v25 = vsub.f32 %v367_v59, %v393_v23  ;;  %v430_v18 = vsel %vm369_vm15, %v1342_v22, 0.0 }
 0x332   :  { %431 = vadd.xlane.f32.xlu2 %v430_v18 }
 0x333   :  { %v1346_v27 = vpop.eup %1041  ;;  %1043 = vpow2.f32 %v412_v24  ;;  %v416_v29 = vmul.f32 1.442695, %v401_v25  ;;  %v372_v38 = vpop.xlane.xlu2 %371 }
 0x334   :  { %v436_v30 = vsel %vm369_vm15, %v1346_v27, 0.0  ;;  %v394_v39 = vsub.f32 %v247_v63, %v372_v38 }
 0x335   :  { %1045 = vpow2.f32 %v416_v29  ;;  %437 = vadd.xlane.f32.xlu0 %v436_v30 }
 0x336   :  { %1047 = vpow2.f32 %v408_v31  ;;  %v402_v40 = vmul.f32 1.442695, %v394_v39 }
 0x338   :  { %1049 = vpow2.f32 %v402_v40 }
 0x339   :  { %v1350_v32 = vpop.eup %1043 }
 0x33a   :  { %v433_v33 = vsel %vm369_vm15, %v1350_v32, 0.0 }
 0x33b   :  { %v1354_v34 = vpop.eup %1045  ;;  %434 = vadd.xlane.f32.xlu2 %v433_v33  ;;  %v375_v41 = vpop.xlane.xlu0 %374 }
 0x33c   :  { %v439_v35 = vsel %vm369_vm15, %v1354_v34, 0.0  ;;  %v1358_v36 = vpop.eup %1047  ;;  %v395_v42 = vsub.f32 %v250_v4, %v375_v41 }
 0x33d   :  { %440 = vadd.xlane.f32.xlu1 %v439_v35  ;;  %v427_v37 = vsel %vm369_vm15, %v1358_v36, 0.0 }
 0x33e   :  { %v404_v43 = vmul.f32 1.442695, %v395_v42  ;;  %v1366_v44 = vpop.eup %1049 }
 0x33f   :  { %v418_v45 = vsel %vm369_vm15, %v1366_v44, 0.0 }
 0x340   :  { %1051 = vpow2.f32 %v404_v43 }
 0x345   :  { %428 = vadd.xlane.f32.xlu1 %v427_v37 }
 0x346   :  { %v1370_v46 = vpop.eup %1051 }
 0x347   :  { %v421_v47 = vsel %vm369_vm15, %v1370_v46, 0.0 }
 0x349   :  { %1006 = vrot.lane.b32.xlu0 %v1312_v26, %s1193_s19 }
 0x353   :  { %1011 = vrot.lane.b32.xlu2 %v1312_v26, %s1194_s20 }
 0x35e   :  { %1016 = vrot.lane.b32.xlu1 %v1312_v26, %s1195_s21 }
 0x366   :  { %1021 = vrot.lane.b32.xlu1 %v1312_v26, %s1196_s22 }
 0x373   :  { %419 = vadd.xlane.f32.xlu0 %v418_v45 }
 0x37c   :  { %422 = vadd.xlane.f32.xlu2 %v421_v47 }
 0x39f   :  { %v426_v48 = vpop.xlane.xlu1 %425 }
 0x3a0   :  { %1053 = vrcp.f32 %v426_v48  ;;  %v481_v1 = vand.u32 2147483648, %v426_v48  ;;  %vm475_vm6 = vweird.f32 %v426_v48  ;;  %v479_v9 = vand.u32 2147483647, %v426_v48 }
 0x3a2   :  { %v482_v15 = vor.u32 1.1754944e-38, %v481_v1  ;;  %vm480_vm9 = vcmp.eq.f32.partialorder %v479_v9, 8.507059e+37 }
 0x3a5   :  { %v432_v26 = vpop.xlane.xlu2 %431 }
 0x3a6   :  { %v1054_v49 = vpop.eup %1053  ;;  %1055 = vrcp.f32 %v432_v26  ;;  %v509_v60 = vand.u32 2147483648, %v432_v26  ;;  %v507_v61 = vand.u32 2147483647, %v432_v26  ;;  %vm503_vm2 = vweird.f32 %v432_v26 }
 0x3a7   :  { %v471_v50 = vmul.f32 %v1054_v49, %v426_v48  ;;  %vm476_vm3 = vweird.f32 %v1054_v49 }
 0x3a8   :  { %v1376_v62 = vpop.xlane.xlu0 %437  ;;  %v510_v5 = vor.u32 1.1754944e-38, %v509_v60  ;;  %vm508_vm5 = vcmp.eq.f32.partialorder %v507_v61, 8.507059e+37  ;;  %vm1380_vm7 = vmor %vm475_vm6, %vm476_vm3 }
 0x3a9   :  { %v472_v52 = vsub.f32 1.0, %v471_v50  ;;  %v535_v60 = vand.u32 2147483647, %v1376_v62 }
 0x3ab   :  { %v473_v58 = vmul.f32 %v1054_v49, %v472_v52 }
 0x3ac   :  { %v1056_v51 = vpop.eup %1055 }
 0x3ad   :  { %v499_v53 = vmul.f32 %v1056_v51, %v432_v26  ;;  %vm504_vm1 = vweird.f32 %v1056_v51  ;;  %v474_v4 = vadd.f32 %v1054_v49, %v473_v58 }
 0x3ae   :  { %v435_v54 = vpop.xlane.xlu2 %434  ;;  %vm505_vm4 = vmor %vm503_vm2, %vm504_vm1 }
 0x3af   :  { %v500_v55 = vsub.f32 1.0, %v499_v53  ;;  %1057 = vrcp.f32 %v435_v54  ;;  %v523_v19 = vand.u32 2147483648, %v435_v54  ;;  %v478_v21 = vsel %vm1380_vm7, %v1054_v49, %v474_v4 }
 0x3b0   :  { %v1374_v56 = vpop.xlane.xlu1 %440  ;;  %1059 = vrcp.f32 %v1376_v62  ;;  %v521_v25 = vand.u32 2147483647, %v435_v54  ;;  %vm517_vm10 = vweird.f32 %v435_v54  ;;  %v483_v30 = vsel %vm480_vm9, %v482_v15, %v478_v21 }
 0x3b1   :  { %v501_v59 = vmul.f32 %v1056_v51, %v500_v55  ;;  %v524_v33 = vor.u32 1.1754944e-38, %v523_v19  ;;  %v556_v39 = vmul.f32 %v1338_v13, %v483_v30  ;;  %vm536_vm7 = vcmp.eq.f32.partialorder %v535_v60, 8.507059e+37 }
 0x3b2   :  { %vm522_vm12 = vcmp.eq.f32.partialorder %v521_v25, 8.507059e+37  ;;  %vm545_vm9 = vweird.f32 %v1374_v56 }
 0x3b3   :  { %v502_v63 = vadd.f32 %v1056_v51, %v501_v59  ;;  %v537_v59 = vand.u32 2147483648, %v1376_v62 }
 0x3b5   :  { %v1058_v3 = vpop.eup %1057  ;;  %v506_v6 = vsel %vm505_vm4, %v1056_v51, %v502_v63  ;;  %v538_v1 = vor.u32 1.1754944e-38, %v537_v59 }
 0x3b6   :  { %v513_v7 = vmul.f32 %v1058_v3, %v435_v54  ;;  %v1012_v8 = vpop.permute.xlu2 %1011  ;;  %v511_v12 = vsel %vm508_vm5, %v510_v5, %v506_v6  ;;  %vm518_vm8 = vweird.f32 %v1058_v3  ;;  %v1060_v18 = vpop.eup %1059  ;;  %vm531_vm5 = vweird.f32 %v1376_v62 }
 0x3b7   :  { %v1013_v11 = vunpack.i.l.bf16 %v1012_v8  ;;  %v1014_v20 = vunpack.i.h.bf16 %v1012_v8  ;;  %v558_v24 = vmul.f32 %v1342_v22, %v511_v12  ;;  %vm519_vm11 = vmor %vm517_vm10, %vm518_vm8  ;;  %v527_v35 = vmul.f32 %v1060_v18, %v1376_v62 }
 0x3b8   :  { %v514_v16 = vsub.f32 1.0, %v513_v7  ;;  %v429_v17 = vpop.xlane.xlu1 %428  ;;  %vm532_vm4 = vweird.f32 %v1060_v18  ;;  %v549_v8 = vand.u32 2147483647, %v1374_v56 }
 0x3b9   :  { %1061 = vrcp.f32 %v429_v17  ;;  %658 = vmatpush.msrb.mxu3 %v1013_v11  ;;  %v528_v42 = vsub.f32 1.0, %v527_v35  ;;  %v495_v48 = vand.u32 2147483648, %v429_v17  ;;  %v493_v49 = vand.u32 2147483647, %v429_v17  ;;  %vm533_vm6 = vmor %vm531_vm5, %vm532_vm4 }
 0x3ba   :  { %v515_v23 = vmul.f32 %v1058_v3, %v514_v16  ;;  %1063 = vrcp.f32 %v1374_v56  ;;  %vm489_vm1 = vweird.f32 %v429_v17 }
 0x3bb   :  { %659 = vmatpush.msrb.mxu3 %v1014_v20  ;;  %v1007_v28 = vpop.permute.xlu0 %1006  ;;  %v529_v50 = vmul.f32 %v1060_v18, %v528_v42  ;;  %v496_v52 = vor.u32 1.1754944e-38, %v495_v48  ;;  %vm494_vm3 = vcmp.eq.f32.partialorder %v493_v49, 8.507059e+37 }
 0x3bc   :  { %975 = vmatmul.msk.f32.vlgmr.msrb.gmra.mxu3 %vm369_vm15, %v558_v24  ;;  %v1008_v29 = vunpack.i.l.bf16 %v1007_v28  ;;  %v516_v31 = vadd.f32 %v1058_v3, %v515_v23  ;;  %v1009_v22 = vunpack.i.h.bf16 %v1007_v28 }
 0x3bd   :  { %v530_v55 = vadd.f32 %v1060_v18, %v529_v50  ;;  %v735_v50 = vld [vmem:[%s1515_s4 + $0x10] sm:$0xff] }
 0x3be   :  { %623 = vmatpush.msrb.mxu2 %v1008_v29  ;;  %v520_v37 = vsel %vm519_vm11, %v1058_v3, %v516_v31  ;;  %vm550_vm11 = vcmp.eq.f32.partialorder %v549_v8, 8.507059e+37 }
 0x3bf   :  { %v1062_v38 = vpop.eup %1061  ;;  %v525_v40 = vsel %vm522_vm12, %v524_v33, %v520_v37  ;;  %v534_v61 = vsel %vm533_vm6, %v1060_v18, %v530_v55 }
 0x3c0   :  { %v485_v41 = vmul.f32 %v1062_v38, %v429_v17  ;;  %624 = vmatpush.msrb.mxu2 %v1009_v22  ;;  %v559_v45 = vmul.f32 %v1350_v32, %v525_v40  ;;  %v1064_v47 = vpop.eup %1063  ;;  %vm490_vm13 = vweird.f32 %v1062_v38  ;;  %v539_v4 = vsel %vm536_vm7, %v538_v1, %v534_v61 }
 0x3c1   :  { %973 = vmatmul.msk.f32.vlgmr.msrb.gmra.mxu2 %vm369_vm15, %v556_v39  ;;  %v541_v51 = vmul.f32 %v1064_v47, %v1374_v56  ;;  %vm491_vm2 = vmor %vm489_vm1, %vm490_vm13  ;;  %vm546_vm8 = vweird.f32 %v1064_v47  ;;  %v560_v62 = vmul.f32 %v1346_v27, %v539_v4  ;;  %vm730_vm7 = vcmask 195584  }
 0x3c2   :  { %v486_v43 = vsub.f32 1.0, %v485_v41  ;;  %vm547_vm10 = vmor %vm545_vm9, %vm546_vm8 }
 0x3c3   :  { %v542_v32 = vsub.f32 1.0, %v541_v51  ;;  %v734_v51 = vld [vmem:[%s1515_s4 + $0x8] sm:$0xff] }
 0x3c4   :  { %v487_v26 = vmul.f32 %v1062_v38, %v486_v43  ;;  %976 = vmatmul.msk.f32.gmra.mxu3 %vm369_vm15, %v559_v45 }
 0x3c5   :  { %v543_v63 = vmul.f32 %v1064_v47, %v542_v32 }
 0x3c6   :  { %v488_v13 = vadd.f32 %v1062_v38, %v487_v26 }
 0x3c7   :  { %v544_v6 = vadd.f32 %v1064_v47, %v543_v63 }
 0x3c8   :  { %v492_v53 = vsel %vm491_vm2, %v1062_v38, %v488_v13  ;;  %v733_v13 = vld [vmem:[%s1515_s4] sm:$0xff] }
 0x3c9   :  { %v497_v54 = vsel %vm494_vm3, %v496_v52, %v492_v53  ;;  %v548_v9 = vsel %vm547_vm10, %v1064_v47, %v544_v6  ;;  %v737_v6 = vperm.slane %v1301_v57, 0 }
 0x3ca   :  { %v557_v58 = vmul.f32 %v1358_v36, %v497_v54  ;;  %v551_v36 = vand.u32 2147483648, %v1374_v56 }
 0x3cc   :  { %974 = vmatmul.msk.f32.gmra.mxu2 %vm369_vm15, %v557_v58  ;;  %v552_v11 = vor.u32 1.1754944e-38, %v551_v36 }
 0x3ce   :  { %v553_v15 = vsel %vm550_vm11, %v552_v11, %v548_v9 }
 0x3cf   :  { %v561_v17 = vmul.f32 %v1354_v34, %v553_v15 }
 0x3d0   :  { %v1017_v3 = vpop.permute.xlu1 %1016 }
 0x3d1   :  { %v1018_v5 = vunpack.i.l.bf16 %v1017_v3  ;;  %v1019_v7 = vunpack.i.h.bf16 %v1017_v3 }
 0x3d3   :  { %693 = vmatpush.msra.mxu0 %v1018_v5 }
 0x3d5   :  { %694 = vmatpush.msra.mxu0 %v1019_v7 }
 0x3d6   :  { %977 = vmatmul.msk.f32.vlgmr.msra.gmra.mxu0 %vm369_vm15, %v560_v62 }
 0x3d8   :  { %v1022_v12 = vpop.permute.xlu1 %1021 }
 0x3d9   :  { %v1023_v14 = vunpack.i.l.bf16 %v1022_v12  ;;  %v1024_v16 = vunpack.i.h.bf16 %v1022_v12 }
 0x3db   :  { %588 = vmatpush.msrb.mxu1 %v1023_v14 }
 0x3dd   :  { %589 = vmatpush.msrb.mxu1 %v1024_v16 }
 0x3de   :  { %978 = vmatmul.msk.f32.gmra.mxu0 %vm369_vm15, %v561_v17 }
 0x3e6   :  { %v420_v27 = vpop.xlane.xlu0 %419 }
 0x3e7   :  { %1065 = vrcp.f32 %v420_v27  ;;  %v453_v23 = vand.u32 2147483648, %v420_v27  ;;  %v451_v25 = vand.u32 2147483647, %v420_v27  ;;  %vm447_vm13 = vweird.f32 %v420_v27 }
 0x3e9   :  { %v454_v28 = vor.u32 1.1754944e-38, %v453_v23  ;;  %vm452_vm2 = vcmp.eq.f32.partialorder %v451_v25, 8.507059e+37  ;;  %v854_v23 = vld [vmem:[%s1516_s5 + $0x18] sm:$0xff] }
 0x3ea   :  { %877 = vmatpush.msra.mxu2 %v854_v23 }
 0x3ed   :  { %v1066_v56 = vpop.eup %1065 }
 0x3ee   :  { %v443_v19 = vmul.f32 %v1066_v56, %v420_v27  ;;  %vm448_vm12 = vweird.f32 %v1066_v56 }
 0x3ef   :  { %v423_v20 = vpop.xlane.xlu2 %422  ;;  %vm449_vm1 = vmor %vm447_vm13, %vm448_vm12 }
 0x3f0   :  { %v444_v21 = vsub.f32 1.0, %v443_v19  ;;  %1067 = vrcp.f32 %v423_v20  ;;  %v467_v22 = vand.u32 2147483648, %v423_v20  ;;  %v465_v38 = vand.u32 2147483647, %v423_v20 }
 0x3f1   :  { %vm461_vm4 = vweird.f32 %v423_v20 }
 0x3f2   :  { %v445_v24 = vmul.f32 %v1066_v56, %v444_v21  ;;  %v468_v40 = vor.u32 1.1754944e-38, %v467_v22  ;;  %vm466_vm6 = vcmp.eq.f32.partialorder %v465_v38, 8.507059e+37 }
 0x3f4   :  { %v446_v18 = vadd.f32 %v1066_v56, %v445_v24  ;;  %v853_v24 = vld [vmem:[%s1516_s5 + $0x10] sm:$0xff] }
 0x3f5   :  { %878 = vmatpush.msra.mxu2 %v853_v24 }
 0x3f6   :  { %v1068_v29 = vpop.eup %1067  ;;  %v450_v34 = vsel %vm449_vm1, %v1066_v56, %v446_v18 }
 0x3f7   :  { %v457_v30 = vmul.f32 %v1068_v29, %v423_v20  ;;  %v455_v31 = vsel %vm452_vm2, %v454_v28, %v450_v34  ;;  %vm462_vm3 = vweird.f32 %v1068_v29  ;;  %v851_v28 = vld [vmem:[%s1516_s5] sm:$0xff] }
 0x3f8   :  { %v554_v33 = vmul.f32 %v1366_v44, %v455_v31  ;;  %vm463_vm5 = vmor %vm461_vm4, %vm462_vm3 }
 0x3f9   :  { %v458_v35 = vsub.f32 1.0, %v457_v30 }
 0x3fa   :  { %971 = vmatmul.msk.f32.vlgmr.msrb.gmra.mxu1 %vm369_vm15, %v554_v33 }
 0x3fb   :  { %v459_v37 = vmul.f32 %v1068_v29, %v458_v35 }
 0x3fd   :  { %v460_v39 = vadd.f32 %v1068_v29, %v459_v37 }
 0x3ff   :  { %v464_v41 = vsel %vm463_vm5, %v1068_v29, %v460_v39  ;;  %vm899_vm5 = vcmask 523264  }
 0x400   :  { %v469_v42 = vsel %vm466_vm6, %v468_v40, %v464_v41 }
 0x401   :  { %v555_v43 = vmul.f32 %v1370_v46, %v469_v42  ;;  %v736_v46 = vld [vmem:[%s1515_s4 + $0x18] sm:$0xff] }
 0x402   :  { %756 = vmatpush.msra.mxu1 %v736_v46 }
 0x403   :  { %972 = vmatmul.msk.f32.gmra.mxu1 %vm369_vm15, %v555_v43 }
 0x404   :  { %757 = vmatpush.msra.mxu1 %v735_v50  ;;  %v895_v50 = vld [vmem:[%s1518_s7 + $0x28] sm:$0xff] }
 0x406   :  { %758 = vmatpush.msra.mxu1 %v734_v51 }
 0x408   :  { %759 = vmatpush.msra.mxu1 %v733_v13 }
 0x43f   :  { %v661_v26 = vpop.f32.mrf.mxu3 }
 0x444   :  { %v626_v45 = vpop.f32.mrf.mxu2 }
 0x447   :  { %v664_v49 = vpop.f32.mrf.mxu3 }
 0x44f   :  { %v629_v44 = vpop.f32.mrf.mxu2 }
 0x450   :  { %706 = vrot.lane.b32.xlu0 %v629_v44, %s1182_s18 }
 0x453   :  { %v696_v47 = vpop.f32.mrf.mxu0 }
 0x454   :  { %720 = vrot.lane.b32.xlu1 %v696_v47, %s1197_s1 }
 0x45b   :  { %v699_v48 = vpop.f32.mrf.mxu0 }
 0x45c   :  { %722 = vrot.lane.b32.xlu2 %v699_v48, %s1197_s1  ;;  %704 = vrot.lane.b32.xlu1 %v626_v45, %s1182_s18 }
 0x464   :  { %712 = vrot.lane.b32.xlu1 %v661_v26, %s1198_s0  ;;  %v897_v26 = vld [vmem:[%s1518_s7 + $0x38] sm:$0xff] }
 0x465   :  { %914 = vmatpush.msra.mxu3 %v897_v26 }
 0x46c   :  { %714 = vrot.lane.b32.xlu1 %v664_v49, %s1198_s0  ;;  %v896_v49 = vld [vmem:[%s1518_s7 + $0x30] sm:$0xff] }
 0x46d   :  { %915 = vmatpush.msra.mxu3 %v896_v49 }
 0x46f   :  { %916 = vmatpush.msra.mxu3 %v895_v50 }
 0x477   :  { %v591_v54 = vpop.f32.mrf.mxu1 }
 0x480   :  { %v594_v61 = vpop.f32.mrf.mxu1 }
 0x4b6   :  { %v723_v3 = vpop.permute.xlu2 %722 }
 0x4c2   :  { %v707_v60 = vpop.permute.xlu0 %706 }
 0x4c3   :  { %v727_v63 = vsel %vm218_vm14, %v594_v61, %v707_v60 }
 0x4c6   :  { %v721_v52 = vpop.permute.xlu1 %720 }
 0x4ce   :  { %v705_v53 = vpop.permute.xlu1 %704 }
 0x4cf   :  { %v726_v55 = vsel %vm218_vm14, %v591_v54, %v705_v53 }
 0x4d6   :  { %v713_v32 = vpop.permute.xlu1 %712 }
 0x4d7   :  { %v728_v58 = vsel %vm369_vm15, %v726_v55, %v713_v32  ;;  %v893_v55 = vld [vmem:[%s1518_s7 + $0x18] sm:$0xff] }
 0x4d8   :  { %v731_v59 = vsel %vm730_vm7, %v728_v58, %v721_v52  ;;  %v894_v52 = vld [vmem:[%s1518_s7 + $0x20] sm:$0xff] }
 0x4d9   :  { %979 = vmatmul.msk.f32.vlgmr.msra.gmra.mxu1 %vm81_vm0, %v731_v59  ;;  %917 = vmatpush.msra.mxu3 %v894_v52 }
 0x4db   :  { %918 = vmatpush.msra.mxu3 %v893_v55 }
 0x4de   :  { %v715_v1 = vpop.permute.xlu1 %714 }
 0x4df   :  { %v729_v4 = vsel %vm369_vm15, %v727_v63, %v715_v1 }
 0x4e0   :  { %v732_v5 = vsel %vm730_vm7, %v729_v4, %v723_v3 }
 0x4e1   :  { %980 = vmatmul.msk.f32.gmra.mxu1 %vm81_vm0, %v732_v5 }
 0x556   :  { %v761_v36 = vpop.f32.mrf.mxu1 }
 0x557   :  { %v762_v7 = vadd.f32 %v761_v36, %v737_v6  ;;  %v845_v36 = vperm.slane %v1301_v57, 4 }
 0x559   :  { %v1433_v62 = vadd.f32 %v762_v7, %v1265_v0 }
 0x55b   :  { %v769_v8 = vsel %vm81_vm0, %v1433_v62, 0.0 }
 0x55c   :  { %770 = vadd.xlane.f32.xlu1 %v769_v8 }
 0x55e   :  { %v764_v9 = vpop.f32.mrf.mxu1 }
 0x55f   :  { %v765_v11 = vadd.f32 %v764_v9, %v737_v6 }
 0x561   :  { %v1438_v12 = vadd.f32 %v765_v11, %v1269_v2  ;;  %v848_v11 = vperm.slane %v1301_v57, 5 }
 0x563   :  { %v772_v14 = vsel %vm81_vm0, %v1438_v12, 0.0 }
 0x564   :  { %773 = vadd.xlane.f32.xlu0 %v772_v14 }
 0x5cf   :  { %v771_v15 = vpop.xlane.xlu1 %770 }
 0x5d0   :  { %v775_v16 = vmul.f32 %v771_v15, %v1273_v10 }
 0x5d2   :  { %v1444_v17 = vsub.f32 %v1433_v62, %v775_v16 }
 0x5d4   :  { %v779_v0 = vmul.f32 %v1444_v17, %v1444_v17 }
 0x5d6   :  { %v781_v27 = vsel %vm81_vm0, %v779_v0, 0.0 }
 0x5d7   :  { %782 = vadd.xlane.f32.xlu2 %v781_v27  ;;  %v774_v56 = vpop.xlane.xlu0 %773 }
 0x5d8   :  { %v776_v2 = vmul.f32 %v774_v56, %v1273_v10  ;;  %v852_v10 = vld [vmem:[%s1516_s5 + $0x8] sm:$0xff] }
 0x5d9   :  { %879 = vmatpush.msra.mxu2 %v852_v10  ;;  %v891_v10 = vld [vmem:[%s1518_s7 + $0x8] sm:$0xff] }
 0x5da   :  { %v1451_v19 = vsub.f32 %v1438_v12, %v776_v2 }
 0x5db   :  { %880 = vmatpush.msra.mxu2 %v851_v28 }
 0x5dc   :  { %v780_v20 = vmul.f32 %v1451_v19, %v1451_v19 }
 0x5de   :  { %v784_v21 = vsel %vm81_vm0, %v780_v20, 0.0 }
 0x5df   :  { %785 = vadd.xlane.f32.xlu1 %v784_v21 }
 0x64a   :  { %v783_v25 = vpop.xlane.xlu2 %782 }
 0x64b   :  { %v787_v18 = vmul.f32 0.032258064, %v783_v25  ;;  %v892_v25 = vld [vmem:[%s1518_s7 + $0x10] sm:$0xff] }
 0x64c   :  { %919 = vmatpush.msra.mxu3 %v892_v25 }
 0x64d   :  { %1069 = vrsqrt.f32 %v787_v18  ;;  %vm796_vm14 = vcmp.eq.f32.partialorder %v787_v18, inf  ;;  %v799_v42 = vand.u32 2147483648, %v787_v18  ;;  %vm798_vm15 = vcmp.eq.f32.partialorder %v787_v18, 0.0 }
 0x64e   :  { %920 = vmatpush.msra.mxu3 %v891_v10 }
 0x652   :  { %v786_v29 = vpop.xlane.xlu1 %785 }
 0x653   :  { %v1070_v34 = vpop.eup %1069  ;;  %v788_v30 = vmul.f32 0.032258064, %v786_v29 }
 0x654   :  { %v790_v31 = vmul.f32 %v1070_v34, %v787_v18 }
 0x655   :  { %1071 = vrsqrt.f32 %v788_v30  ;;  %vm808_vm8 = vcmp.eq.f32.partialorder %v788_v30, inf  ;;  %v811_v13 = vand.u32 2147483648, %v788_v30  ;;  %vm810_vm9 = vcmp.eq.f32.partialorder %v788_v30, 0.0 }
 0x656   :  { %v791_v33 = vmul.f32 %v1070_v34, %v790_v31 }
 0x658   :  { %v792_v35 = vmul.f32 0.5, %v791_v33 }
 0x65a   :  { %v793_v22 = vsub.f32 1.5, %v792_v35  ;;  %v1077_v35 = vld [vmem:[#allocation7] sm:$0x3f] }
 0x65b   :  { %v1072_v37 = vpop.eup %1071 }
 0x65c   :  { %v794_v38 = vmul.f32 %v1070_v34, %v793_v22  ;;  %v802_v39 = vmul.f32 %v1072_v37, %v788_v30  ;;  %v898_v22 = vperm.slane %v1077_v35, 1 }
 0x65e   :  { %v795_v40 = vmul.f32 %v794_v38, %v787_v18  ;;  %v803_v41 = vmul.f32 %v1072_v37, %v802_v39 }
 0x660   :  { %v797_v43 = vsel %vm796_vm14, %v787_v18, %v795_v40  ;;  %v804_v45 = vmul.f32 0.5, %v803_v41  ;;  %v890_v18 = vld [vmem:[%s1518_s7] sm:$0xff]  ;;  %s1199_s7 = smov [#allocation8]  }
 0x661   :  { %v800_v44 = vsel %vm798_vm15, %v799_v42, %v797_v43  ;;  %921 = vmatpush.msra.mxu3 %v890_v18 }
 0x662   :  { %v813_v47 = vadd.f32 1e-06, %v800_v44  ;;  %v805_v48 = vsub.f32 1.5, %v804_v45 }
 0x664   :  { %1073 = vrcp.f32 %v813_v47  ;;  %v806_v46 = vmul.f32 %v1072_v37, %v805_v48  ;;  %v826_v61 = vand.u32 2147483648, %v813_v47  ;;  %v824_v1 = vand.u32 2147483647, %v813_v47 }
 0x665   :  { %vm820_vm11 = vweird.f32 %v813_v47 }
 0x666   :  { %v807_v51 = vmul.f32 %v806_v46, %v788_v30  ;;  %v827_v5 = vor.u32 1.1754944e-38, %v826_v61  ;;  %vm825_vm13 = vcmp.eq.f32.partialorder %v824_v1, 8.507059e+37 }
 0x668   :  { %v809_v53 = vsel %vm808_vm8, %v788_v30, %v807_v51 }
 0x669   :  { %v812_v54 = vsel %vm810_vm9, %v811_v13, %v809_v53 }
 0x66a   :  { %v1074_v32 = vpop.eup %1073  ;;  %v814_v58 = vadd.f32 1e-06, %v812_v54 }
 0x66b   :  { %v816_v59 = vmul.f32 %v1074_v32, %v813_v47  ;;  %vm821_vm10 = vweird.f32 %v1074_v32 }
 0x66c   :  { %1075 = vrcp.f32 %v814_v58  ;;  %vm822_vm12 = vmor %vm820_vm11, %vm821_vm10  ;;  %v840_v15 = vand.u32 2147483648, %v814_v58  ;;  %v838_v27 = vand.u32 2147483647, %v814_v58  ;;  %vm834_vm2 = vweird.f32 %v814_v58 }
 0x66d   :  { %v817_v60 = vsub.f32 1.0, %v816_v59 }
 0x66e   :  { %v841_v20 = vor.u32 1.1754944e-38, %v840_v15  ;;  %vm839_vm4 = vcmp.eq.f32.partialorder %v838_v27, 8.507059e+37 }
 0x66f   :  { %v818_v63 = vmul.f32 %v1074_v32, %v817_v60 }
 0x671   :  { %v819_v3 = vadd.f32 %v1074_v32, %v818_v63 }
 0x672   :  { %v1076_v4 = vpop.eup %1075 }
 0x673   :  { %v823_v6 = vsel %vm822_vm12, %v1074_v32, %v819_v3  ;;  %v830_v7 = vmul.f32 %v1076_v4, %v814_v58  ;;  %vm835_vm1 = vweird.f32 %v1076_v4 }
 0x674   :  { %v828_v8 = vsel %vm825_vm13, %v827_v5, %v823_v6  ;;  %vm836_vm3 = vmor %vm834_vm2, %vm835_vm1 }
 0x675   :  { %v843_v9 = vmul.f32 %v828_v8, %v1444_v17  ;;  %v831_v14 = vsub.f32 1.0, %v830_v7 }
 0x677   :  { %v846_v16 = vadd.f32 %v845_v36, %v843_v9  ;;  %v832_v0 = vmul.f32 %v1076_v4, %v831_v14 }
 0x679   :  { %v849_v56 = vadd.f32 %v848_v11, %v846_v16  ;;  %v833_v2 = vadd.f32 %v1076_v4, %v832_v0 }
 0x67b   :  { %981 = vmatmul.msk.f32.vlgmr.msra.gmra.mxu2 %vm81_vm0, %v849_v56  ;;  %v837_v21 = vsel %vm836_vm3, %v1076_v4, %v833_v2 }
 0x67c   :  { %v842_v23 = vsel %vm839_vm4, %v841_v20, %v837_v21 }
 0x67d   :  { %v844_v17 = vmul.f32 %v842_v23, %v1451_v19  ;;  %v1026_v19 = vld [vmem:[%s1517_s6] ss:$0 sm:$0xff]  ;;  %s937_s6 = sshll.u32 %s1199_s7, 4  ;;  %s938_s6 = int_to_ptr.vmem [resolvable:$true] %s937_s6 }
 0x67f   :  { %v847_v24 = vadd.f32 %v845_v36, %v844_v17 }
 0x681   :  { %v850_v57 = vadd.f32 %v848_v11, %v847_v24 }
 0x683   :  { %982 = vmatmul.msk.f32.gmra.mxu2 %vm81_vm0, %v850_v57 }
 0x6fe   :  { %v882_v28 = vpop.f32.mrf.mxu2 }
 0x6ff   :  { %v883_v29 = vadd.f32 %v1026_v19, %v882_v28 }
 0x701   :  { %v888_v34 = vmax.f32 %v883_v29, 0.0 }
 0x703   :  { %983 = vmatmul.msk.f32.vlgmr.msra.gmra.mxu3 %vm899_vm5, %v888_v34 }
 0x706   :  { %v885_v30 = vpop.f32.mrf.mxu2 }
 0x707   :  { %v886_v31 = vadd.f32 %v1026_v19, %v885_v30 }
 0x709   :  { %v889_v33 = vmax.f32 %v886_v31, 0.0 }
 0x70b   :  { %984 = vmatmul.msk.f32.gmra.mxu3 %vm899_vm5, %v889_v33 }
 0x786   :  { %v923_v37 = vpop.f32.mrf.mxu3 }
 0x787   :  { %v924_v38 = vadd.f32 %v923_v37, %v898_v22 }
 0x789   :  { %v929_v39 = vadd.f32 %v924_v38, %v1433_v62 }
 0x78b   :  { %931 = vst.msk [vmem:[#allocation8] sm:$0xff] %vm81_vm0, %v929_v39 }
 0x78e   :  { %v926_v40 = vpop.f32.mrf.mxu3 }
 0x78f   :  { %v927_v41 = vadd.f32 %v926_v40, %v898_v22 }
 0x791   :  { %v930_v42 = vadd.f32 %v927_v41, %v1438_v12 }
 0x793   :  { %932 = vst.msk [vmem:[#allocation8 + $0x8] sm:$0xff] %vm81_vm0, %v930_v42 }
 0x794   :  { %945 = dma.vmem_to_hbm [thread:$0]  %s938_s6, 256, %s940_s2, [#allocation4], %s1181_s17, %s1181_s17, %s1182_s18  }
 0x795   :  { %1178 = dma.done.wait [#allocation4], 256  }
 0x796   :  { %1179 = vsyncadd [#allocation4], 4294967040 }
 0x797   :  { %950 = vsyncpa [#allocation3], 1 }
 0x798   :  { %951 = vsyncpa [#allocation6], 1 }
 0x799   :  { %952 = vsyncpa [#allocation4], 1 }

</bundles_post_ra>
